<compile_context>
chip_gen: v7x
topology: tpu7x:2x2x1
jax: 0.10.0
libtpu: 0.0.40
codegen_flags: <defaults>
</compile_context>

<pallas_src>
import functools

import jax
import jax.numpy as jnp
from jax.experimental import pallas as pl
from jax.experimental.pallas import tpu as pltpu

# Lane-width candidates (widest first).  Wider last dim -> wide unmasked vst
# and fewer grid steps (amortizes the ~0.35 us/step pipeline overhead).
_LANE_CANDIDATES = (4096, 2048, 1024, 512, 256, 128)
# Below this size, plain XLA add is faster than a pallas_call.
_PALLAS_MIN_BYTES = 512 * 1024
# Aim for at least this many grid steps on large inputs so the DMA pipeline
# double-buffers and the "parallel" axis can shard across v7x's two TCs.
_MIN_GRID = 4


@functools.lru_cache(maxsize=None)
def _chip_params():
    """(target_block_bytes, vmem_limit_bytes or None), per TPU generation.

    v7x : fast HBM (~3.2 TB/s) -> 6 MiB blocks; raise scoped VMEM to 48 MiB
          (physical 64 MiB/TC) so double-buffered in+out (~4x block = 24 MiB)
          has headroom.
    v6e : 4 MiB blocks (16 MiB double-buffered) fit the 32 MiB scoped default.
    v5e / unknown: 2 MiB blocks (8 MiB) fit the 16 MiB scoped default.
    """
    try:
        kind = jax.devices()[0].device_kind.lower()
    except Exception:  # pragma: no cover - defensive
        kind = ""
    if "v7" in kind or "7x" in kind:
        return 6 * 1024 * 1024, 48 * 1024 * 1024
    if "v6" in kind:
        return 4 * 1024 * 1024, None
    return 2 * 1024 * 1024, None


def _add_one_kernel(x_ref, o_ref):
    # Whole-tile elementwise add on the VPU; the kernel is HBM-bound.
    o_ref[...] = x_ref[...] + jnp.asarray(1, dtype=x_ref.dtype)


def _add_one_2d(x2d, *, donate=False, apply_min_grid=True):
    """x2d: (rows, lane) with lane a multiple of 128.  Returns x2d + 1."""
    rows, lane = x2d.shape
    itemsize = jnp.dtype(x2d.dtype).itemsize
    target_block_bytes, vmem_limit = _chip_params()

    # Dtype-aware sublane alignment: f32 -> 8, bf16/f16 -> 16, int8/fp8 -> 32
    # (sub-32-bit dtypes pack along sublanes; keep blocks at the min tile).
    row_align = max(8, 32 // max(itemsize, 1))

    # Largest row block that keeps ~target_block_bytes per input block.
    block_rows = max(1, target_block_bytes // (lane * itemsize))
    block_rows = min(block_rows, rows)

    # Guarantee >= _MIN_GRID steps on large inputs so DMA-in / compute /
    # DMA-out pipeline and the parallel axis can shard across v7x's two TCs.
    if apply_min_grid and rows >= _MIN_GRID * row_align:
        cap = max(row_align, ((rows // _MIN_GRID) // row_align) * row_align)
        block_rows = min(block_rows, cap)

    if block_rows < rows:
        block_rows = max(row_align, (block_rows // row_align) * row_align)
        block_rows = min(block_rows, rows)

    grid = pl.cdiv(rows, block_rows)

    cparams = dict(dimension_semantics=("parallel",))
    if vmem_limit is not None:
        cparams["vmem_limit_bytes"] = vmem_limit

    cost = pl.CostEstimate(
        flops=rows * lane,
        transcendentals=0,
        bytes_accessed=2 * rows * lane * itemsize,
    )

    return pl.pallas_call(
        _add_one_kernel,
        out_shape=jax.ShapeDtypeStruct((rows, lane), x2d.dtype),
        grid_spec=pl.GridSpec(
            grid=(grid,),
            in_specs=[pl.BlockSpec((block_rows, lane), lambda i: (i, 0))],
            out_specs=pl.BlockSpec((block_rows, lane), lambda i: (i, 0)),
        ),
        compiler_params=pltpu.CompilerParams(**cparams),
        cost_estimate=cost,
        # Only a real saving if the caller donates x at the jit boundary
        # (jax.jit(..., donate_argnums=...)); otherwise XLA inserts a copy.
        input_output_aliases={0: 0} if donate else {},
    )(x2d)


def model1_forward(x, *, donate=False, min_pallas_bytes=_PALLAS_MIN_BYTES):
    """Equivalent of Model1.forward: returns x + 1, same shape & dtype.

    donate=True must only be used when the caller actually donates x at the
    jit boundary (jax.jit(..., donate_argnums=...)).
    """
    orig_shape = x.shape
    n = x.size
    if n == 0:
        return x
    itemsize = jnp.dtype(x.dtype).itemsize
    one = jnp.asarray(1, dtype=x.dtype)

    # Tiny tensors: XLA's fused elementwise add beats the custom-call +
    # pipeline overhead of a pallas_call.
    if n * itemsize < min_pallas_bytes:
        return x + one

    flat = x.reshape(-1)  # contiguous reshape: no HBM copy

    # Widest lane width that divides n exactly (prefer one leaving >= 8 rows
    # so sublanes are fully used).  The reshape below is then copy-free.
    divisors = [L for L in _LANE_CANDIDATES if n % L == 0]
    if divisors:
        deep = [L for L in divisors if n // L >= 8]
        lane = deep[0] if deep else divisors[0]
        out2d = _add_one_2d(flat.reshape(n // lane, lane), donate=donate)
        return out2d.reshape(orig_shape)

    # Ragged element count (n % 128 != 0): the flat array cannot be reshaped
    # copy-free into a lane-dense slab, and any pad / concatenate repair would
    # cost a full extra HBM pass over the data -- more than the kernel saves.
    # Plain XLA is already at the HBM roofline for an elementwise add, so it
    # is the fastest correct path here.
    return x + one


if __name__ == "__main__":
    key = jax.random.PRNGKey(0)
    k1, k2, k3, k4 = jax.random.split(key, 4)

    # Primary example at the module's implied small shape; force the Pallas
    # path (min_pallas_bytes=0) so the kernel itself is exercised.
    x = jax.random.normal(k1, (2, 4, 16, 16), dtype=jnp.float32)
    y = model1_forward(x, min_pallas_bytes=0)
    jax.block_until_ready(y)
    assert y.shape == x.shape and y.dtype == x.dtype
    assert jnp.allclose(y, x + 1.0)

    # Larger input (1 MiB) takes the default Pallas path with a multi-step
    # grid (exercises the DMA/compute pipeline and the min-grid cap).
    x_big = jax.random.normal(k2, (256, 1024), dtype=jnp.float32)
    y_big = model1_forward(x_big)
    jax.block_until_ready(y_big)
    assert jnp.allclose(y_big, x_big + 1.0)

    # bf16 input (exercises dtype-aware alignment / lowering).
    x_bf = jax.random.normal(k3, (64, 512), dtype=jnp.bfloat16)
    y_bf = model1_forward(x_bf, min_pallas_bytes=0)
    jax.block_until_ready(y_bf)
    assert y_bf.dtype == jnp.bfloat16 and jnp.allclose(
        y_bf.astype(jnp.float32), (x_bf + jnp.bfloat16(1)).astype(jnp.float32))

    # Ragged element count (not % 128): plain-XLA fallback path.
    x_rag = jax.random.normal(k4, (3, 5, 7), dtype=jnp.float32)
    y_rag = model1_forward(x_rag)
    jax.block_until_ready(y_rag)
    assert y_rag.shape == x_rag.shape and jnp.allclose(y_rag, x_rag + 1.0)

    print("KERNEL_OK")
</pallas_src>

<mosaic_0001>
module attributes {stable_mosaic.version = 11 : i64} {
  func.func @_add_one_kernel(%arg0: i32, %arg1: memref<8x256xf32, #tpu.memory_space<vmem>>, %arg2: memref<8x256xf32, #tpu.memory_space<vmem>>) attributes {dimension_semantics = [#tpu.dimension_semantics<parallel>], iteration_bounds = array<i64: 1>, scalar_prefetch = 0 : i64, scratch_operands = 0 : i64, tpu.core_type = #tpu.core_type<tc>, window_params = [{transform_indices = @transform_0, window_bounds = array<i64: 8, 256>}, {transform_indices = @transform_1, window_bounds = array<i64: 8, 256>}]} {
    %c0 = arith.constant 0 : index
    %c0_0 = arith.constant 0 : index
    %0 = vector.load %arg1[%c0, %c0_0] : memref<8x256xf32, #tpu.memory_space<vmem>>, vector<8x256xf32>
    %cst = arith.constant 1.000000e+00 : f32
    %1 = vector.broadcast %cst : f32 to vector<8x256xf32>
    %2 = arith.addf %0, %1 : vector<8x256xf32>
    %c0_1 = arith.constant 0 : index
    %c0_2 = arith.constant 0 : index
    %3 = vector.load %arg2[%c0_1, %c0_2] : memref<8x256xf32, #tpu.memory_space<vmem>>, vector<8x256xf32>
    tpu.vector_store %arg2[%c0_1, %c0_2], %2 {strides = array<i32>} : memref<8x256xf32, #tpu.memory_space<vmem>>, vector<8x256xf32>,
    return
  }
  func.func @transform_0(%arg0: i32) -> (i32, i32) {
    %c0_i32 = arith.constant 0 : i32
    %c0_i32_0 = arith.constant 0 : i32
    return %arg0, %c0_i32 : i32, i32
  }
  func.func @transform_1(%arg0: i32) -> (i32, i32) {
    %c0_i32 = arith.constant 0 : i32
    %c0_i32_0 = arith.constant 0 : i32
    return %arg0, %c0_i32 : i32, i32
  }
}

</mosaic_0001>

<bundles_post_ra>
// kernel: tpu_custom_call.1
= control target key start
LH: loop header
LB: loop body
LE: loop exit
PB: predicated region body
PF: predicated region fallthrough
CT: control target
= control target key end

     0   :  { %6 = vsyncpa [#allocation3], 0  ;;  %s128_s0 = inlined_call_operand.hbm [shape: f32[8,256], index: 0, kind: input, shape index: {}]   ;;  %s129_s1 = inlined_call_operand.hbm [shape: f32[8,256], index: 1, kind: output, shape index: {}]  }
   0x1   :  { %7 = vsyncpa [#allocation4], 0  ;;  %s92_s6 = smov [#allocation2]   ;;  %s44_s10 = scalar_lea.hbm %s128_s0, 256 }
   0x2   :  { %s14_s7 = sshll.u32 %s92_s6, 4  ;;  %p45_p0 = scmp.ne.s32.totalorder %s128_s0, %s44_s10  ;;  %s15_s7 = int_to_ptr.vmem [resolvable:$true] %s14_s7 }
   0x3   :  { %p48_p1 = scmp.lt.u32.totalorder %s44_s10, %s128_s0 }
   0x5   :  { %p50_p2 = pnand %p48_p1, %p45_p0 }
   0x7   :  { %53 = shalt.err (!%p50_p2)
}
   0x8   :  { %s54_s15 = scalar_lea.vmem %s15_s7, 256  ;;  %p59_p4 = scmp.lt.s32.totalorder %s15_s7, %s15_s7 }
   0x9   :  { %p55_p3 = scmp.ne.s32.totalorder %s15_s7, %s54_s15  ;;  %p60_p5 = scmp.lt.s32.totalorder %s54_s15, %s54_s15 }
   0xb   :  { %p61_p6 = por %p60_p5, %p59_p4 }
   0xd   :  { %p62_p7 = pnand %p61_p6, %p55_p3 }
   0xf   :  { %65 = shalt.err (!%p62_p7)
}
  0x10   :  { %17 = dma.hbm_to_vmem [thread:$0]  %s128_s0, 256, %s15_s7, [#allocation3]  }
  0x11   :  { %88 = dma.done.wait [#allocation3], 256  }
  0x12   :  { %89 = vsyncadd [#allocation3], 4294967040  ;;  %s93_s18 = smov [#allocation5]   ;;  %v21_v0 = vld [vmem:[#allocation2] sm:$0xff]  ;;  %v22_v1 = vld [vmem:[#allocation2 + $0x8] sm:$0xff] }
  0x13   :  { %s33_s19 = sshll.u32 %s93_s18, 4  ;;  %v23_v2 = vadd.f32 1.0, %v21_v0  ;;  %v24_v3 = vadd.f32 1.0, %v22_v1  ;;  %s34_s19 = int_to_ptr.vmem [resolvable:$true] %s33_s19 }
  0x14   :  { %s66_s20 = scalar_lea.vmem %s34_s19, 256  ;;  %p71_p9 = scmp.lt.s32.totalorder %s34_s19, %s34_s19 }
  0x15   :  { %25 = vst [vmem:[#allocation5] sm:$0xff] %v23_v2  ;;  %26 = vst [vmem:[#allocation5 + $0x8] sm:$0xff] %v24_v3  ;;  %p67_p8 = scmp.ne.s32.totalorder %s34_s19, %s66_s20  ;;  %p72_p10 = scmp.lt.s32.totalorder %s66_s20, %s66_s20 }
  0x17   :  { %p73_p11 = por %p72_p10, %p71_p9 }
  0x19   :  { %p74_p12 = pnand %p73_p11, %p67_p8 }
  0x1b   :  { %77 = shalt.err (!%p74_p12)
}
  0x1c   :  { %s78_s22 = scalar_lea.hbm %s129_s1, 256 }
  0x1d   :  { %p79_p13 = scmp.ne.s32.totalorder %s129_s1, %s78_s22  ;;  %p82_p0 = scmp.lt.u32.totalorder %s78_s22, %s129_s1 }
  0x1f   :  { %p84_p1 = pnand %p82_p0, %p79_p13 }
  0x21   :  { %87 = shalt.err (!%p84_p1)
}
  0x22   :  { %36 = dma.vmem_to_hbm [thread:$0]  %s34_s19, 256, %s129_s1, [#allocation4]  }
  0x23   :  { %90 = dma.done.wait [#allocation4], 256  }
  0x24   :  { %91 = vsyncadd [#allocation4], 4294967040 }
  0x25   :  { %40 = vsyncpa [#allocation3], 1 }
  0x26   :  { %41 = vsyncpa [#allocation4], 1 }

</bundles_post_ra>
